<compile_context>
chip_gen: v5e
topology: v5e:2x2
jax: 0.10.0
libtpu: 0.0.40
codegen_flags: <defaults>
</compile_context>

<pallas_src>
import jax
import jax.numpy as jnp
from jax.experimental import pallas as pl
from jax.experimental.pallas import tpu as pltpu

IN_F = 1000       # fc1 in_features
HID_F = 100       # fc1 out_features / fc2 in_features
OUT_F = 31        # fc2 out_features
HID_PAD = 128     # lane-dense hidden width
OUT_PAD = 128     # lane-dense output width


def net1_kernel(x_ref, w1_ref, b1_ref, w2_ref, b2_ref, o_ref):
    # Cast the VMEM x tile to bf16 just before the MXU (no extra HBM pass).
    x_bf = x_ref[...].astype(jnp.bfloat16)
    # fc1 + ReLU : (TB, 1000) bf16 @ (1000, 128) bf16 -> f32 accumulate
    h = jnp.dot(x_bf, w1_ref[...], preferred_element_type=jnp.float32)
    h = jnp.maximum(h + b1_ref[...], 0.0)             # b1 is (1, 128) f32
    # fc2 + ReLU : (TB, 128) bf16 @ (128, 128) bf16 -> f32 accumulate
    o = jnp.dot(h.astype(jnp.bfloat16), w2_ref[...],
                preferred_element_type=jnp.float32)
    o = jnp.maximum(o + b2_ref[...], 0.0)              # b2 is (1, 128) f32
    o_ref[...] = o.astype(o_ref.dtype)


def _pad_params(w1, b1, w2, b2):
    """Zero-pad params to lane-dense shapes; zeros are inert under matmul/ReLU."""
    w1p = jnp.zeros((IN_F, HID_PAD), jnp.bfloat16).at[:, :HID_F].set(
        w1.astype(jnp.bfloat16))
    b1p = jnp.zeros((1, HID_PAD), jnp.float32).at[:, :HID_F].set(
        b1.astype(jnp.float32))
    w2p = jnp.zeros((HID_PAD, OUT_PAD), jnp.bfloat16).at[:HID_F, :OUT_F].set(
        w2.astype(jnp.bfloat16))
    b2p = jnp.zeros((1, OUT_PAD), jnp.float32).at[:, :OUT_F].set(
        b2.astype(jnp.float32))
    return w1p, b1p, w2p, b2p


def net1_forward(x, w1, b1, w2, b2, *, tb=2048):
    """x: (B, 1000) features from net0.forward2 (f32, or bf16 if the producer
    already emits bf16). Returns (B, 31) f32."""
    B = x.shape[0]

    # Balanced batch tiling: pick the number of grid steps first, then a tile
    # that is a multiple of 8 (sublane) so total padding is only a few rows.
    b8 = ((B + 7) // 8) * 8
    num_steps = pl.cdiv(b8, tb)
    TB = ((pl.cdiv(b8, num_steps) + 7) // 8) * 8
    Bp = num_steps * TB

    # Only materialize a padded copy when padding is actually required.
    if Bp != B:
        x_in = jnp.zeros((Bp, IN_F), x.dtype).at[:B, :].set(x)
    else:
        x_in = x

    w1p, b1p, w2p, b2p = _pad_params(w1, b1, w2, b2)

    batch_spec = lambda shape: pl.BlockSpec(shape, lambda i: (i, 0))
    const_spec = lambda shape: pl.BlockSpec(shape, lambda i: (0, 0))

    x_bytes = x_in.dtype.itemsize
    cost = pl.CostEstimate(
        flops=2 * Bp * (IN_F * HID_PAD + HID_PAD * OUT_PAD),
        transcendentals=0,
        bytes_accessed=(Bp * IN_F * x_bytes        # x stream
                        + IN_F * HID_PAD * 2       # w1 (bf16)
                        + HID_PAD * OUT_PAD * 2    # w2 (bf16)
                        + (HID_PAD + OUT_PAD) * 4  # biases
                        + Bp * OUT_PAD * 4),       # output
    )

    # Double-buffered VMEM footprint (x tile + out tile + weights/biases),
    # plus headroom; fits the scoped limits on v5e/v6e/v7x.
    buf_bytes = (TB * IN_F * x_bytes
                 + TB * OUT_PAD * 4
                 + IN_F * HID_PAD * 2
                 + HID_PAD * OUT_PAD * 2
                 + 8 * HID_PAD * 4
                 + 8 * OUT_PAD * 4)
    vmem_limit = 2 * buf_bytes + (4 << 20)

    out = pl.pallas_call(
        net1_kernel,
        out_shape=jax.ShapeDtypeStruct((Bp, OUT_PAD), jnp.float32),
        grid_spec=pl.GridSpec(
            grid=(num_steps,),
            in_specs=[
                batch_spec((TB, IN_F)),          # x tile, pipelined over batch
                const_spec((IN_F, HID_PAD)),     # w1 (bf16), VMEM-resident
                const_spec((1, HID_PAD)),        # b1
                const_spec((HID_PAD, OUT_PAD)),  # w2 (bf16)
                const_spec((1, OUT_PAD)),        # b2
            ],
            out_specs=batch_spec((TB, OUT_PAD)),
        ),
        compiler_params=pltpu.CompilerParams(
            dimension_semantics=("parallel",),
            vmem_limit_bytes=int(vmem_limit)),
        cost_estimate=cost,
    )(x_in, w1p, b1p, w2p, b2p)

    # Padded batch rows / padded output lanes are garbage/zeros: slice them off.
    return out[:B, :OUT_F]


def init_linear(key, fan_in, fan_out):
    # Mimic torch.nn.Linear default init: U(-1/sqrt(fan_in), 1/sqrt(fan_in))
    kw, kb = jax.random.split(key)
    bound = 1.0 / jnp.sqrt(fan_in)
    w = jax.random.uniform(kw, (fan_in, fan_out), jnp.float32, -bound, bound)
    b = jax.random.uniform(kb, (fan_out,), jnp.float32, -bound, bound)
    return w, b


if __name__ == "__main__":
    key = jax.random.PRNGKey(0)
    kx, k1, k2 = jax.random.split(key, 3)

    B = 2
    # Input: output of net0.forward2(x) — a (B, 1000) feature vector.
    x = jax.random.normal(kx, (B, IN_F), jnp.float32)

    w1, b1 = init_linear(k1, IN_F, HID_F)
    w2, b2 = init_linear(k2, HID_F, OUT_F)

    out = net1_forward(x, w1, b1, w2, b2)
    out = jax.block_until_ready(out)
    assert out.shape == (B, OUT_F)

    # Reference mirroring the kernel's bf16 matmul inputs (f32 accumulation).
    xb = x.astype(jnp.bfloat16).astype(jnp.float32)
    w1b = w1.astype(jnp.bfloat16).astype(jnp.float32)
    w2b = w2.astype(jnp.bfloat16).astype(jnp.float32)
    h = jnp.maximum(xb @ w1b + b1, 0.0)
    hb = h.astype(jnp.bfloat16).astype(jnp.float32)
    ref = jnp.maximum(hb @ w2b + b2, 0.0)
    assert jnp.allclose(out, ref, atol=2e-4, rtol=2e-4), "bf16-path mismatch"

    # Loose check against the pure-f32 Net1 semantics (bf16 is a deliberate,
    # documented precision change for the HBM-bound inference path).
    ref32 = jnp.maximum(x @ w1 + b1, 0.0)
    ref32 = jnp.maximum(ref32 @ w2 + b2, 0.0)
    assert jnp.allclose(out, ref32, atol=5e-2, rtol=5e-2), "f32 semantics drift"

    print("KERNEL_OK")
</pallas_src>

<mosaic_0001>
module attributes {stable_mosaic.version = 11 : i64} {
  func.func @net1_kernel(%arg0: i32, %arg1: memref<8x1000xf32, #tpu.memory_space<vmem>>, %arg2: memref<1000x128xbf16, #tpu.memory_space<vmem>>, %arg3: memref<1x128xf32, #tpu.memory_space<vmem>>, %arg4: memref<128x128xbf16, #tpu.memory_space<vmem>>, %arg5: memref<1x128xf32, #tpu.memory_space<vmem>>, %arg6: memref<8x128xf32, #tpu.memory_space<vmem>>) attributes {dimension_semantics = [#tpu.dimension_semantics<parallel>], iteration_bounds = array<i64: 1>, scalar_prefetch = 0 : i64, scratch_operands = 0 : i64, tpu.core_type = #tpu.core_type<tc>, window_params = [{transform_indices = @transform_0, window_bounds = array<i64: 8, 1000>}, {pipeline_mode = #tpu.pipeline_mode<synchronous>, transform_indices = @transform_1, window_bounds = array<i64: 1000, 128>}, {pipeline_mode = #tpu.pipeline_mode<synchronous>, transform_indices = @transform_2, window_bounds = array<i64: 1, 128>}, {pipeline_mode = #tpu.pipeline_mode<synchronous>, transform_indices = @transform_3, window_bounds = array<i64: 128, 128>}, {pipeline_mode = #tpu.pipeline_mode<synchronous>, transform_indices = @transform_4, window_bounds = array<i64: 1, 128>}, {transform_indices = @transform_5, window_bounds = array<i64: 8, 128>}]} {
    %c0 = arith.constant 0 : index
    %c0_0 = arith.constant 0 : index
    %0 = vector.load %arg1[%c0, %c0_0] : memref<8x1000xf32, #tpu.memory_space<vmem>>, vector<8x1000xf32>
    %1 = arith.truncf %0 : vector<8x1000xf32> to vector<8x1000xbf16>
    %c0_1 = arith.constant 0 : index
    %c0_2 = arith.constant 0 : index
    %2 = vector.load %arg2[%c0_1, %c0_2] : memref<1000x128xbf16, #tpu.memory_space<vmem>>, vector<1000x128xbf16>
    %cst = arith.constant dense<0.000000e+00> : vector<8x128xf32>
    %3 = tpu.matmul %1, %2, %cst {dimension_numbers = #tpu.dot_dimension_numbers<[1], [0], [0], [1], [0, 0, 1, 1], [], []>} : vector<8x1000xbf16>, vector<1000x128xbf16>, vector<8x128xf32> -> vector<8x128xf32>
    %c0_3 = arith.constant 0 : index
    %c0_4 = arith.constant 0 : index
    %4 = vector.load %arg3[%c0_3, %c0_4] : memref<1x128xf32, #tpu.memory_space<vmem>>, vector<1x128xf32>
    %5 = vector.broadcast %4 : vector<1x128xf32> to vector<8x128xf32>
    %6 = arith.addf %3, %5 : vector<8x128xf32>
    %cst_5 = arith.constant 0.000000e+00 : f32
    %7 = vector.broadcast %cst_5 : f32 to vector<8x128xf32>
    %8 = arith.maximumf %6, %7 : vector<8x128xf32>
    %9 = arith.truncf %8 : vector<8x128xf32> to vector<8x128xbf16>
    %c0_6 = arith.constant 0 : index
    %c0_7 = arith.constant 0 : index
    %10 = vector.load %arg4[%c0_6, %c0_7] : memref<128x128xbf16, #tpu.memory_space<vmem>>, vector<128x128xbf16>
    %cst_8 = arith.constant dense<0.000000e+00> : vector<8x128xf32>
    %11 = tpu.matmul %9, %10, %cst_8 {dimension_numbers = #tpu.dot_dimension_numbers<[1], [0], [0], [1], [0, 0, 1, 1], [], []>} : vector<8x128xbf16>, vector<128x128xbf16>, vector<8x128xf32> -> vector<8x128xf32>
    %c0_9 = arith.constant 0 : index
    %c0_10 = arith.constant 0 : index
    %12 = vector.load %arg5[%c0_9, %c0_10] : memref<1x128xf32, #tpu.memory_space<vmem>>, vector<1x128xf32>
    %13 = vector.broadcast %12 : vector<1x128xf32> to vector<8x128xf32>
    %14 = arith.addf %11, %13 : vector<8x128xf32>
    %cst_11 = arith.constant 0.000000e+00 : f32
    %15 = vector.broadcast %cst_11 : f32 to vector<8x128xf32>
    %16 = arith.maximumf %14, %15 : vector<8x128xf32>
    %c0_12 = arith.constant 0 : index
    %c0_13 = arith.constant 0 : index
    %17 = vector.load %arg6[%c0_12, %c0_13] : memref<8x128xf32, #tpu.memory_space<vmem>>, vector<8x128xf32>
    tpu.vector_store %arg6[%c0_12, %c0_13], %16 {strides = array<i32>} : memref<8x128xf32, #tpu.memory_space<vmem>>, vector<8x128xf32>,
    return
  }
  func.func @transform_0(%arg0: i32) -> (i32, i32) {
    %c0_i32 = arith.constant 0 : i32
    %c0_i32_0 = arith.constant 0 : i32
    return %arg0, %c0_i32 : i32, i32
  }
  func.func @transform_1(%arg0: i32) -> (i32, i32) {
    %c0_i32 = arith.constant 0 : i32
    %c0_i32_0 = arith.constant 0 : i32
    %c0_i32_1 = arith.constant 0 : i32
    return %c0_i32, %c0_i32_0 : i32, i32
  }
  func.func @transform_2(%arg0: i32) -> (i32, i32) {
    %c0_i32 = arith.constant 0 : i32
    %c0_i32_0 = arith.constant 0 : i32
    %c0_i32_1 = arith.constant 0 : i32
    return %c0_i32, %c0_i32_0 : i32, i32
  }
  func.func @transform_3(%arg0: i32) -> (i32, i32) {
    %c0_i32 = arith.constant 0 : i32
    %c0_i32_0 = arith.constant 0 : i32
    %c0_i32_1 = arith.constant 0 : i32
    return %c0_i32, %c0_i32_0 : i32, i32
  }
  func.func @transform_4(%arg0: i32) -> (i32, i32) {
    %c0_i32 = arith.constant 0 : i32
    %c0_i32_0 = arith.constant 0 : i32
    %c0_i32_1 = arith.constant 0 : i32
    return %c0_i32, %c0_i32_0 : i32, i32
  }
  func.func @transform_5(%arg0: i32) -> (i32, i32) {
    %c0_i32 = arith.constant 0 : i32
    %c0_i32_0 = arith.constant 0 : i32
    return %arg0, %c0_i32 : i32, i32
  }
}

</mosaic_0001>

<bundles_post_ra>
// kernel: tpu_custom_call.1
= control target key start
LH: loop header
LB: loop body
LE: loop exit
PB: predicated region body
PF: predicated region fallthrough
CT: control target
= control target key end

     0   :  { %10 = vsyncpa [#allocation3], 0  ;;  %s1317_s0 = inlined_call_operand.hbm [shape: f32[8,1000], index: 0, kind: input, shape index: {}]   ;;  %s1318_s1 = inlined_call_operand.hbm [shape: bf16[1000,128], index: 1, kind: input, shape index: {}]   ;;  %s1319_s2 = inlined_call_operand.vmem [shape: f32[1,128], index: 2, kind: input, shape index: {}]   ;;  %s1320_s3 = inlined_call_operand.hbm [shape: bf16[128,128], index: 3, kind: input, shape index: {}]   ;;  %s1321_s4 = inlined_call_operand.vmem [shape: f32[1,128], index: 4, kind: input, shape index: {}]   ;;  %s1322_s5 = inlined_call_operand.hbm [shape: f32[8,128], index: 5, kind: output, shape index: {}]  }
   0x1   :  { %11 = vsyncpa [#allocation6], 0  ;;  %s28_s20 = sshll.u32 %s1318_s1, 4  ;;  %s29_s20 = int_to_ptr.hbm [resolvable:$true] %s28_s20 }
   0x2   :  { %12 = vsyncpa [#allocation4], 0  ;;  %s1263_s21 = smov [#allocation5]   ;;  %s18_s25 = sshll.u32 %s1317_s0, 4  ;;  %s19_s25 = int_to_ptr.hbm [resolvable:$true] %s18_s25 }
   0x3   :  { %s30_s22 = sshll.u32 %s1263_s21, 4  ;;  %s1264_s26 = smov 64   ;;  %s31_s22 = int_to_ptr.vmem [resolvable:$true] %s30_s22 }
   0x4   :  { %s1265_s27 = smov 4   ;;  %s1266_s28 = smov [#allocation2]  }
   0x5   :  { %36 = dma.hbm_to_vmem [thread:$0]  %s29_s20, 8000, %s31_s22, [#allocation6], %s1264_s26, %s1264_s26, %s1265_s27  }
   0x6   :  { %s20_s29 = sshll.u32 %s1266_s28, 4  ;;  %s43_s7 = sshll.u32 %s1320_s3, 4  ;;  %s21_s29 = int_to_ptr.vmem [resolvable:$true] %s20_s29  ;;  %s44_s7 = int_to_ptr.hbm [resolvable:$true] %s43_s7 }
   0x7   :  { %23 = dma.hbm_to_vmem [thread:$0]  %s19_s25, 1024, %s21_s29, [#allocation3]  }
   0x8   :  { %s1267_s1 = smov [#allocation7]  }
   0x9   :  { %s45_s8 = sshll.u32 %s1267_s1, 4  ;;  %s46_s8 = int_to_ptr.vmem [resolvable:$true] %s45_s8 }
   0xa   :  { %51 = dma.hbm_to_vmem [thread:$0]  %s44_s7, 1024, %s46_s8, [#allocation6], %s1264_s26, %s1264_s26, %s1265_s27  }
   0xb   :  { %1257 = dma.done.wait [#allocation3], 1024  }
   0xc   :  { %1258 = vsyncadd [#allocation3], 4294966272 }
   0xd   :  { %1259 = dma.done.wait [#allocation6], 9024  }
   0xe   :  { %1260 = vsyncadd [#allocation6], 4294958272  ;;  %v1090_v0 = vld [vmem:[#allocation5 + $0x38] sm:$0xff]  ;;  %v1089_v4 = vld [vmem:[#allocation5 + $0x30] sm:$0xff]  ;;  %vm591_vm0 = vcmask 1043456   ;;  %vm587_vm1 = vcmask 850944  }
   0xf   :  { %v1098_v1 = vld [vmem:[#allocation5 + $0x78] sm:$0xff]  ;;  %595 = vmatpush.bf16.msra.mxu0 %v1090_v0  ;;  %v1097_v5 = vld [vmem:[#allocation5 + $0x70] sm:$0xff]  ;;  %v1088_v8 = vld [vmem:[#allocation5 + $0x28] sm:$0xff]  ;;  %s1268_s10 = smov [#allocation8]   ;;  %s791_s14 = sshll.u32 %s1322_s5, 4  ;;  %s792_s14 = int_to_ptr.hbm [resolvable:$true] %s791_s14 }
  0x10   :  { %v1106_v2 = vld [vmem:[#allocation5 + $0xb8] sm:$0xff]  ;;  %608 = vmatpush.bf16.msra.mxu1 %v1098_v1  ;;  %v1105_v6 = vld [vmem:[#allocation5 + $0xb0] sm:$0xff]  ;;  %v1096_v9 = vld [vmem:[#allocation5 + $0x68] sm:$0xff]  ;;  %s789_s11 = sshll.u32 %s1268_s10, 4  ;;  %s790_s11 = int_to_ptr.vmem [resolvable:$true] %s789_s11 }
  0x11   :  { %v1114_v3 = vld [vmem:[#allocation5 + $0xf8] sm:$0xff]  ;;  %621 = vmatpush.bf16.msra.mxu2 %v1106_v2  ;;  %v1113_v7 = vld [vmem:[#allocation5 + $0xf0] sm:$0xff]  ;;  %v1104_v10 = vld [vmem:[#allocation5 + $0xa8] sm:$0xff] }
  0x12   :  { %634 = vmatpush.bf16.msra.mxu3 %v1114_v3  ;;  %v1112_v11 = vld [vmem:[#allocation5 + $0xe8] sm:$0xff]  ;;  %v1087_v12 = vld [vmem:[#allocation5 + $0x20] sm:$0xff]  ;;  %v1086_v16 = vld [vmem:[#allocation5 + $0x18] sm:$0xff] }
  0x13   :  { %596 = vmatpush.bf16.msra.mxu0 %v1089_v4  ;;  %v1095_v13 = vld [vmem:[#allocation5 + $0x60] sm:$0xff]  ;;  %v1094_v17 = vld [vmem:[#allocation5 + $0x58] sm:$0xff]  ;;  %v1085_v20 = vld [vmem:[#allocation5 + $0x10] sm:$0xff] }
  0x14   :  { %609 = vmatpush.bf16.msra.mxu1 %v1097_v5  ;;  %v1103_v14 = vld [vmem:[#allocation5 + $0xa0] sm:$0xff]  ;;  %v1102_v18 = vld [vmem:[#allocation5 + $0x98] sm:$0xff]  ;;  %v1093_v21 = vld [vmem:[#allocation5 + $0x50] sm:$0xff] }
  0x15   :  { %622 = vmatpush.bf16.msra.mxu2 %v1105_v6  ;;  %v1111_v15 = vld [vmem:[#allocation5 + $0xe0] sm:$0xff]  ;;  %v1110_v19 = vld [vmem:[#allocation5 + $0xd8] sm:$0xff]  ;;  %v1101_v22 = vld [vmem:[#allocation5 + $0x90] sm:$0xff] }
  0x16   :  { %635 = vmatpush.bf16.msra.mxu3 %v1113_v7  ;;  %v1109_v23 = vld [vmem:[#allocation5 + $0xd0] sm:$0xff]  ;;  %v1084_v25 = vld [vmem:[#allocation5 + $0x8] sm:$0xff]  ;;  %v1083_v30 = vld [vmem:[#allocation5] sm:$0xff] }
  0x17   :  { %597 = vmatpush.bf16.msra.mxu0 %v1088_v8  ;;  %v207_v24 = vld [vmem:[#allocation5 + $0x1f0] sm:$0xf]  ;;  %v1092_v26 = vld [vmem:[#allocation5 + $0x48] sm:$0xff]  ;;  %v1091_v31 = vld [vmem:[#allocation5 + $0x40] sm:$0xff] }
  0x18   :  { %610 = vmatpush.bf16.msra.mxu1 %v1096_v9  ;;  %v461_v27 = vunpack.c.l.b16 %v207_v24  ;;  %v1100_v28 = vld [vmem:[#allocation5 + $0x88] sm:$0xff]  ;;  %v1099_v32 = vld [vmem:[#allocation5 + $0x80] sm:$0xff]  ;;  %v1122_v35 = vld [vmem:[#allocation5 + $0x138] sm:$0xff] }
  0x19   :  { %623 = vmatpush.bf16.msra.mxu2 %v1104_v10  ;;  %v1108_v29 = vld [vmem:[#allocation5 + $0xc8] sm:$0xff]  ;;  %v1107_v33 = vld [vmem:[#allocation5 + $0xc0] sm:$0xff]  ;;  %v69_v36 = vld [vmem:[#allocation2 + $0x10] sm:$0xff] }
  0x1a   :  { %636 = vmatpush.bf16.msra.mxu3 %v1112_v11  ;;  %v524_v34 = vpack.c.b16 %v461_v27, %v461_v27  ;;  %v67_v37 = vld [vmem:[#allocation2] sm:$0xff]  ;;  %v1130_v38 = vld [vmem:[#allocation5 + $0x178] sm:$0xff]  ;;  %v68_v40 = vld [vmem:[#allocation2 + $0x8] sm:$0xff]  ;;  %v77_v43 = vpack.c.bf16 %v69_v36, %v69_v36 }
  0x1b   :  { %598 = vmatpush.bf16.msra.mxu0 %v1087_v12  ;;  %v70_v39 = vld [vmem:[#allocation2 + $0x18] sm:$0xff]  ;;  %v75_v44 = vpack.c.bf16 %v67_v37, %v67_v37  ;;  %v76_v46 = vpack.c.bf16 %v68_v40, %v68_v40  ;;  %v1121_v47 = vld [vmem:[#allocation5 + $0x130] sm:$0xff]  ;;  %v1144_v50 = vld [vmem:[#allocation5 + $0x1e8] sm:$0xff] }
  0x1c   :  { %611 = vmatpush.bf16.msra.mxu1 %v1095_v13  ;;  %v1138_v41 = vld [vmem:[#allocation5 + $0x1b8] sm:$0xff]  ;;  %v593_v42 = vsel %vm591_vm0, %v524_v34, 0  ;;  %v78_v45 = vpack.c.bf16 %v70_v39, %v70_v39  ;;  %v1129_v48 = vld [vmem:[#allocation5 + $0x170] sm:$0xff]  ;;  %v1120_v51 = vld [vmem:[#allocation5 + $0x128] sm:$0xff] }
  0x1d   :  { %624 = vmatpush.bf16.msra.mxu2 %v1103_v14  ;;  %v1137_v49 = vld [vmem:[#allocation5 + $0x1b0] sm:$0xff]  ;;  %v1128_v52 = vld [vmem:[#allocation5 + $0x168] sm:$0xff]  ;;  %v1143_v54 = vld [vmem:[#allocation5 + $0x1e0] sm:$0xff] }
  0x1e   :  { %637 = vmatpush.bf16.msra.mxu3 %v1111_v15  ;;  %v1136_v53 = vld [vmem:[#allocation5 + $0x1a8] sm:$0xff]  ;;  %v1119_v55 = vld [vmem:[#allocation5 + $0x120] sm:$0xff]  ;;  %v1142_v58 = vld [vmem:[#allocation5 + $0x1d8] sm:$0xff] }
  0x1f   :  { %599 = vmatpush.bf16.msra.mxu0 %v1086_v16  ;;  %v1127_v56 = vld [vmem:[#allocation5 + $0x160] sm:$0xff]  ;;  %v1118_v59 = vld [vmem:[#allocation5 + $0x118] sm:$0xff]  ;;  %v1141_v62 = vld [vmem:[#allocation5 + $0x1d0] sm:$0xff] }
  0x20   :  { %612 = vmatpush.bf16.msra.mxu1 %v1094_v17  ;;  %v1135_v57 = vld [vmem:[#allocation5 + $0x1a0] sm:$0xff]  ;;  %v1126_v60 = vld [vmem:[#allocation5 + $0x158] sm:$0xff]  ;;  %v1117_v63 = vld [vmem:[#allocation5 + $0x110] sm:$0xff] }
  0x21   :  { %625 = vmatpush.bf16.msra.mxu2 %v1102_v18  ;;  %v1134_v61 = vld [vmem:[#allocation5 + $0x198] sm:$0xff]  ;;  %v1125_v0 = vld [vmem:[#allocation5 + $0x150] sm:$0xff]  ;;  %v1140_v2 = vld [vmem:[#allocation5 + $0x1c8] sm:$0xff] }
  0x22   :  { %638 = vmatpush.bf16.msra.mxu3 %v1110_v19  ;;  %v1133_v1 = vld [vmem:[#allocation5 + $0x190] sm:$0xff]  ;;  %v1116_v3 = vld [vmem:[#allocation5 + $0x108] sm:$0xff]  ;;  %v1139_v6 = vld [vmem:[#allocation5 + $0x1c0] sm:$0xff] }
  0x23   :  { %600 = vmatpush.bf16.msra.mxu0 %v1085_v20  ;;  %v1124_v4 = vld [vmem:[#allocation5 + $0x148] sm:$0xff]  ;;  %v74_v7 = vld [vmem:[#allocation2 + $0x38] sm:$0xff]  ;;  %v1115_v9 = vld [vmem:[#allocation5 + $0x100] sm:$0xff] }
  0x24   :  { %613 = vmatpush.bf16.msra.mxu1 %v1093_v21  ;;  %v1132_v5 = vld [vmem:[#allocation5 + $0x188] sm:$0xff]  ;;  %v82_v8 = vpack.c.bf16 %v74_v7, %v74_v7  ;;  %v1123_v10 = vld [vmem:[#allocation5 + $0x140] sm:$0xff]  ;;  %v73_v14 = vld [vmem:[#allocation2 + $0x30] sm:$0xff] }
  0x25   :  { %626 = vmatpush.bf16.msra.mxu2 %v1101_v22  ;;  %v71_v11 = vld [vmem:[#allocation2 + $0x20] sm:$0xff]  ;;  %v72_v13 = vld [vmem:[#allocation2 + $0x28] sm:$0xff]  ;;  %v81_v17 = vpack.c.bf16 %v73_v14, %v73_v14  ;;  %v1149_v21 = vld [vmem:[#allocation7 + $0x20] sm:$0xff] }
  0x26   :  { %639 = vmatpush.bf16.msra.mxu3 %v1109_v23  ;;  %v1131_v12 = vld [vmem:[#allocation5 + $0x180] sm:$0xff]  ;;  %v79_v15 = vpack.c.bf16 %v71_v11, %v71_v11  ;;  %v80_v16 = vpack.c.bf16 %v72_v13, %v72_v13  ;;  %v1152_v18 = vld [vmem:[#allocation7 + $0x38] sm:$0xff] }
  0x27   :  { %601 = vmatpush.bf16.msra.mxu0 %v1084_v25  ;;  %v1151_v19 = vld [vmem:[#allocation7 + $0x30] sm:$0xff]  ;;  %v1150_v20 = vld [vmem:[#allocation7 + $0x28] sm:$0xff]  ;;  %v1148_v22 = vld [vmem:[#allocation7 + $0x18] sm:$0xff] }
  0x28   :  { %614 = vmatpush.bf16.msra.mxu1 %v1092_v26  ;;  %v1147_v24 = vld [vmem:[#allocation7 + $0x10] sm:$0xff]  ;;  %v1146_v26 = vld [vmem:[#allocation7 + $0x8] sm:$0xff] }
  0x29   :  { %627 = vmatpush.bf16.msra.mxu2 %v1100_v28 }
  0x2a   :  { %640 = vmatpush.bf16.msra.mxu3 %v1108_v29 }
  0x2b   :  { %602 = vmatpush.bf16.msra.mxu0 %v1083_v30  ;;  %v1145_v30 = vld [vmem:[#allocation7] sm:$0xff] }
  0x2c   :  { %615 = vmatpush.bf16.msra.mxu1 %v1091_v31 }
  0x2d   :  { %628 = vmatpush.bf16.msra.mxu2 %v1099_v32  ;;  %v1159_v32 = vld [vmem:[%s1319_s2] ss:$0 sm:$0xff] }
  0x2e   :  { %641 = vmatpush.bf16.msra.mxu3 %v1107_v33  ;;  %603 = vmatmul.bf16.vlgmr.msra.gmra.mxu0 %v75_v44 }
  0x2f   :  { %647 = vmatpush.bf16.msrb.mxu0 %v1122_v35  ;;  %616 = vmatmul.bf16.vlgmr.msra.gmra.mxu1 %v76_v46 }
  0x30   :  { %660 = vmatpush.bf16.msrb.mxu1 %v1130_v38  ;;  %629 = vmatmul.bf16.vlgmr.msra.gmra.mxu2 %v77_v43 }
  0x31   :  { %673 = vmatpush.bf16.msrb.mxu2 %v1138_v41  ;;  %642 = vmatmul.bf16.vlgmr.msra.gmra.mxu3 %v78_v45 }
  0x32   :  { %687 = vmatpush.bf16.msrb.mxu3 %v593_v42 }
  0x33   :  { %648 = vmatpush.bf16.msrb.mxu0 %v1121_v47 }
  0x34   :  { %661 = vmatpush.bf16.msrb.mxu1 %v1129_v48 }
  0x35   :  { %674 = vmatpush.bf16.msrb.mxu2 %v1137_v49 }
  0x36   :  { %688 = vmatpush.bf16.msrb.mxu3 %v1144_v50 }
  0x37   :  { %649 = vmatpush.bf16.msrb.mxu0 %v1120_v51 }
  0x38   :  { %662 = vmatpush.bf16.msrb.mxu1 %v1128_v52 }
  0x39   :  { %675 = vmatpush.bf16.msrb.mxu2 %v1136_v53  ;;  %v1160_v53 = vld [vmem:[%s1321_s4] ss:$0 sm:$0xff] }
  0x3a   :  { %689 = vmatpush.bf16.msrb.mxu3 %v1143_v54 }
  0x3b   :  { %650 = vmatpush.bf16.msrb.mxu0 %v1119_v55 }
  0x3c   :  { %663 = vmatpush.bf16.msrb.mxu1 %v1127_v56 }
  0x3d   :  { %676 = vmatpush.bf16.msrb.mxu2 %v1135_v57 }
  0x3e   :  { %690 = vmatpush.bf16.msrb.mxu3 %v1142_v58 }
  0x3f   :  { %651 = vmatpush.bf16.msrb.mxu0 %v1118_v59 }
  0x40   :  { %664 = vmatpush.bf16.msrb.mxu1 %v1126_v60 }
  0x41   :  { %677 = vmatpush.bf16.msrb.mxu2 %v1134_v61 }
  0x42   :  { %691 = vmatpush.bf16.msrb.mxu3 %v1141_v62 }
  0x43   :  { %652 = vmatpush.bf16.msrb.mxu0 %v1117_v63 }
  0x44   :  { %665 = vmatpush.bf16.msrb.mxu1 %v1125_v0 }
  0x45   :  { %678 = vmatpush.bf16.msrb.mxu2 %v1133_v1 }
  0x46   :  { %692 = vmatpush.bf16.msrb.mxu3 %v1140_v2 }
  0x47   :  { %653 = vmatpush.bf16.msrb.mxu0 %v1116_v3 }
  0x48   :  { %666 = vmatpush.bf16.msrb.mxu1 %v1124_v4 }
  0x49   :  { %679 = vmatpush.bf16.msrb.mxu2 %v1132_v5 }
  0x4a   :  { %693 = vmatpush.bf16.msrb.mxu3 %v1139_v6 }
  0x4b   :  { %654 = vmatpush.bf16.msrb.mxu0 %v1115_v9 }
  0x4c   :  { %667 = vmatpush.bf16.msrb.mxu1 %v1123_v10 }
  0x4d   :  { %1050 = vmatmul.msk.bf16.vlgmr.msrb.gmra.mxu3 %vm587_vm1, %v82_v8  ;;  %680 = vmatpush.bf16.msrb.mxu2 %v1131_v12 }
  0x4e   :  { %655 = vmatmul.bf16.vlgmr.msrb.gmra.mxu0 %v79_v15  ;;  %769 = vmatpush.bf16.msra.mxu3 %v1152_v18 }
  0x4f   :  { %668 = vmatmul.bf16.vlgmr.msrb.gmra.mxu1 %v80_v16 }
  0x50   :  { %681 = vmatmul.bf16.vlgmr.msrb.gmra.mxu2 %v81_v17 }
  0x52   :  { %770 = vmatpush.bf16.msra.mxu3 %v1151_v19 }
  0x56   :  { %771 = vmatpush.bf16.msra.mxu3 %v1150_v20 }
  0x5a   :  { %772 = vmatpush.bf16.msra.mxu3 %v1149_v21 }
  0x5e   :  { %773 = vmatpush.bf16.msra.mxu3 %v1148_v22 }
  0x62   :  { %774 = vmatpush.bf16.msra.mxu3 %v1147_v24 }
  0x66   :  { %775 = vmatpush.bf16.msra.mxu3 %v1146_v26 }
  0x6a   :  { %776 = vmatpush.bf16.msra.mxu3 %v1145_v30 }
  0xab   :  { %v604_v23 = vpop.f32.mrf.mxu0 }
  0xac   :  { %v617_v25 = vpop.f32.mrf.mxu1  ;;  %v605_v35 = vadd.f32 %v1159_v32, %v604_v23 }
  0xae   :  { %v618_v36 = vadd.f32 %v617_v25, %v605_v35 }
  0xb3   :  { %v630_v27 = vpop.f32.mrf.mxu2  ;;  %v606_v29 = vpop.f32.mrf.mxu0 }
  0xb4   :  { %v643_v28 = vpop.f32.mrf.mxu3  ;;  %v619_v31 = vpop.f32.mrf.mxu1  ;;  %v631_v37 = vadd.f32 %v630_v27, %v618_v36 }
  0xb6   :  { %v644_v38 = vadd.f32 %v643_v28, %v631_v37 }
  0xbb   :  { %v632_v33 = vpop.f32.mrf.mxu2 }
  0xbc   :  { %v645_v34 = vpop.f32.mrf.mxu3 }
  0xcb   :  { %v656_v39 = vpop.f32.mrf.mxu0 }
  0xcc   :  { %v669_v40 = vpop.f32.mrf.mxu1  ;;  %v657_v41 = vadd.f32 %v656_v39, %v644_v38 }
  0xce   :  { %v670_v43 = vadd.f32 %v669_v40, %v657_v41 }
  0xd0   :  { %v695_v42 = vpop.f32.mrf.mxu3 }
  0xd3   :  { %v682_v44 = vpop.f32.mrf.mxu2  ;;  %v658_v46 = vpop.f32.mrf.mxu0 }
  0xd4   :  { %v683_v45 = vadd.f32 %v682_v44, %v670_v43  ;;  %v671_v47 = vpop.f32.mrf.mxu1 }
  0xd6   :  { %v696_v48 = vadd.f32 %v695_v42, %v683_v45 }
  0xd8   :  { %v697_v49 = vpop.f32.mrf.mxu3  ;;  %v699_v50 = vmax.f32 %v696_v48, 0.0 }
  0xda   :  { %v700_v51 = vpack.c.bf16 %v699_v50, %v699_v50 }
  0xdb   :  { %v684_v52 = vpop.f32.mrf.mxu2 }
  0xdc   :  { %777 = vmatmul.bf16.vlgmr.msra.gmra.mxu3 %v700_v51 }
 0x15f   :  { %v778_v54 = vpop.f32.mrf.mxu3 }
 0x160   :  { %v779_v55 = vadd.f32 %v1160_v53, %v778_v54 }
 0x162   :  { %v782_v56 = vmax.f32 %v779_v55, 0.0 }
 0x164   :  { %783 = vst [vmem:[#allocation8] sm:$0xff] %v782_v56 }
 0x165   :  { %794 = dma.vmem_to_hbm [thread:$0]  %s790_s11, 128, %s792_s14, [#allocation4]  }
 0x167   :  { %v780_v57 = vpop.f32.mrf.mxu3 }
 0x168   :  { %1261 = dma.done.wait [#allocation4], 128  }
 0x169   :  { %1262 = vsyncadd [#allocation4], 4294967168 }
 0x16a   :  { %799 = vsyncpa [#allocation3], 1 }
 0x16b   :  { %800 = vsyncpa [#allocation6], 1 }
 0x16c   :  { %801 = vsyncpa [#allocation4], 1 }

</bundles_post_ra>
